<compile_context>
chip_gen: v7x
topology: tpu7x:2x2x1
jax: 0.10.0
libtpu: 0.0.40
codegen_flags: <defaults>
</compile_context>

<pallas_src>
import functools

import jax
import jax.numpy as jnp
import numpy as np
from jax.experimental import pallas as pl
from jax.experimental.pallas import tpu as pltpu


# ----------------------------- device budgeting -------------------------------
@functools.lru_cache(maxsize=None)
def _vmem_limits():
    """Returns (scoped_vmem_limit_bytes, chunk_data_budget_bytes)."""
    cap = 0
    try:
        cap = int(getattr(pltpu.get_tpu_info(), "vmem_capacity_bytes", 0))
    except Exception:
        cap = 0
    if cap <= 0:
        cap = 64 * 1024 * 1024          # conservative (v7x-sized) fallback
    limit = (cap * 3) // 4              # headroom below physical capacity
    budget = (limit * 4) // 5           # data budget used to size the time chunk
    return int(limit), int(budget)


@functools.lru_cache(maxsize=None)
def _num_tensorcores():
    """Best-effort TensorCores-per-chip (v7x: 2).  Safe fallback is 1."""
    try:
        info = pltpu.get_tpu_info()
        for name in ("num_tensorcores", "tensorcores_per_chip", "num_cores"):
            v = getattr(info, name, None)
            if v:
                return max(1, int(v))
    except Exception:
        pass
    return 1


def _pick_time_chunk(batch_g, fin, hidden, t_steps):
    """Largest time chunk that fits the VMEM budget, capped so the grid keeps
    >= ~4 chunks (pipelined x/y DMAs)."""
    _, budget = _vmem_limits()
    # per-output-timestep bytes (per batch group): x bf16 (double-buffered) +
    # y bf16 (double-buffered) + hoisted-gates f32 scratch (single-buffered).
    bytes_per_t = batch_g * (2 * 2 * fin + 2 * 2 * hidden + 4 * 4 * hidden)
    # resident weights (bf16, worst-case double-buffered) + f32 bias + h/c.
    const = 4 * (fin + hidden) * 4 * hidden + 8 * 4 * hidden + 8 * batch_g * hidden
    vmem_chunk = (budget - const) // max(bytes_per_t, 1)
    cap = max(1, pl.cdiv(t_steps, 4))
    return int(max(1, min(vmem_chunk, cap, t_steps)))


# ------------------------------- LSTM kernel ----------------------------------
def _lstm_layer_kernel(x_ref, wih_ref, whh_ref, b_ref, y_ref, h_sc, c_sc,
                       gx_sc, *, batch, t_chunk, carry_in_regs):
    """One time-chunk of a single-layer LSTM for one batch group.

    grid = (n_batch_groups, n_time_chunks); the chunk axis is serial
    ("arbitrary") and the hidden/cell state is carried in VMEM scratch.

    Ragged last chunk: the loop always runs t_chunk steps; out-of-range steps
    compute on padded (garbage) rows of x and store to out-of-range rows of the
    output block, which Pallas discards on writeback.  The corrupted h/c carry
    after those steps is never read again (they only occur in the last chunk).

    Weights arrive with the i/f/o gate columns pre-scaled by 0.5 so that
    sigmoid(x) can be recovered as 0.5*tanh(x/2)+0.5 from a single tanh pass.
    """
    chunk = pl.program_id(1)
    B = batch
    H = h_sc.shape[-1]

    @pl.when(chunk == 0)
    def _init():
        h_sc[...] = jnp.zeros_like(h_sc)
        c_sc[...] = jnp.zeros_like(c_sc)

    # Hoisted input projection for the whole chunk (bias folded in): one
    # well-shaped bf16 MXU matmul (t_chunk*B, F) @ (F, 4H) -> f32.
    gx_sc[...] = (
        jnp.dot(x_ref[...], wih_ref[...], preferred_element_type=jnp.float32)
        + b_ref[...]
    )

    def step(t, carry):
        if carry_in_regs:
            h, c = carry
        else:
            h = h_sc[...]
            c = c_sc[...]
        row = pl.multiple_of(t * B, B)
        gates = gx_sc[pl.ds(row, B), :] + jnp.dot(
            h.astype(jnp.bfloat16), whh_ref[...],
            preferred_element_type=jnp.float32)                 # (B, 4H)
        # ONE full-width transcendental per step; i/f/o sigmoids recovered on
        # the VPU (weights were pre-scaled by 0.5 on those columns).
        act = jnp.tanh(gates)
        i_g = act[:, 0 * H:1 * H] * 0.5 + 0.5
        f_g = act[:, 1 * H:2 * H] * 0.5 + 0.5
        g_g = act[:, 2 * H:3 * H]
        o_g = act[:, 3 * H:4 * H] * 0.5 + 0.5
        c_new = f_g * c + i_g * g_g
        h_new = o_g * jnp.tanh(c_new)
        y_ref[pl.ds(row, B), :] = h_new.astype(y_ref.dtype)
        if carry_in_regs:
            return h_new, c_new
        h_sc[...] = h_new
        c_sc[...] = c_new
        return carry

    # Partial unroll gives the LLO scheduler cross-iteration visibility so the
    # y store / gx load / next h@W_hh co-schedule into the serial chain.
    unroll = True if t_chunk <= 16 else 4
    if carry_in_regs:
        h, c = jax.lax.fori_loop(0, t_chunk, step, (h_sc[...], c_sc[...]),
                                 unroll=unroll)
        h_sc[...] = h
        c_sc[...] = c
    else:
        # Large B*H: keep state VMEM-resident to bound vreg pressure.
        jax.lax.fori_loop(0, t_chunk, step, 0, unroll=unroll)


# Cached capability flag: single-buffering of grid-invariant operands via
# pl.Buffered(1).  Falls back to default double-buffering if unsupported.
_SINGLE_BUFFER_WEIGHTS = [hasattr(pl, "Buffered")]


def lstm_layer_pallas(x_tm, w_ih, w_hh, b, *, n_groups=1, t_chunk=None):
    """Single-layer LSTM over a time-major (T, B, F) sequence (B % 8 == 0).

    w_ih: (F, 4H), w_hh: (H, 4H) (PyTorch gate order i,f,g,o, pre-transposed),
    b: (1, 4H) = b_ih + b_hh.  Returns (T, B, H) in bfloat16.
    """
    t_steps, B, fin = x_tm.shape
    H = w_hh.shape[0]
    assert w_ih.shape == (fin, 4 * H) and w_hh.shape == (H, 4 * H)
    assert b.shape == (1, 4 * H)
    assert B % 8 == 0, "pad batch to a multiple of 8 before calling"

    if n_groups > 1 and B % (8 * n_groups) != 0:
        n_groups = 1
    bg = B // n_groups

    # Fold the sigmoid->tanh pre-scale (0.5 on the i/f/o gate columns) into
    # the weights/bias; store matmul operands in bf16, bias stays f32.
    gate_scale = jnp.concatenate([
        jnp.full((H,), 0.5, jnp.float32), jnp.full((H,), 0.5, jnp.float32),
        jnp.ones((H,), jnp.float32), jnp.full((H,), 0.5, jnp.float32)])
    w_ih_k = (w_ih.astype(jnp.float32) * gate_scale).astype(jnp.bfloat16)
    w_hh_k = (w_hh.astype(jnp.float32) * gate_scale).astype(jnp.bfloat16)
    b_k = b.astype(jnp.float32) * gate_scale

    if t_chunk is None:
        t_chunk = _pick_time_chunk(bg, fin, H, t_steps)
    t_chunk = max(1, min(int(t_chunk), t_steps))
    n_chunks = pl.cdiv(t_steps, t_chunk)
    vmem_limit, _ = _vmem_limits()

    # Group the batch so each group's rows are contiguous in the flattened
    # time-major layout (free reshape when n_groups == 1).
    x_bf = x_tm.astype(jnp.bfloat16)
    if n_groups == 1:
        x_g = x_bf.reshape(1, t_steps * B, fin)
    else:
        x_g = (x_bf.reshape(t_steps, n_groups, bg, fin)
               .transpose(1, 0, 2, 3).reshape(n_groups, t_steps * bg, fin))

    # Carry h/c as loop values only while they comfortably fit the vreg file.
    carry_in_regs = (6 * bg * H) <= 32 * 1024

    kernel = functools.partial(_lstm_layer_kernel, batch=bg, t_chunk=t_chunk,
                               carry_in_regs=carry_in_regs)

    def run(single_buffer):
        if single_buffer:
            def const_spec(shp):
                return pl.BlockSpec(shp, lambda g, c: (0, 0),
                                    pipeline_mode=pl.Buffered(1))
        else:
            def const_spec(shp):
                return pl.BlockSpec(shp, lambda g, c: (0, 0))
        return pl.pallas_call(
            kernel,
            out_shape=jax.ShapeDtypeStruct((n_groups, t_steps * bg, H),
                                           jnp.bfloat16),
            grid_spec=pltpu.PrefetchScalarGridSpec(
                num_scalar_prefetch=0,
                grid=(n_groups, n_chunks),
                in_specs=[
                    pl.BlockSpec((None, t_chunk * bg, fin),
                                 lambda g, c: (g, c, 0)),        # x chunk (bf16)
                    const_spec((fin, 4 * H)),                    # W_ih (resident)
                    const_spec((H, 4 * H)),                      # W_hh (resident)
                    const_spec((1, 4 * H)),                      # bias  (resident)
                ],
                out_specs=pl.BlockSpec((None, t_chunk * bg, H),
                                       lambda g, c: (g, c, 0)),
                scratch_shapes=[
                    pltpu.VMEM((bg, H), jnp.float32),                 # h carry
                    pltpu.VMEM((bg, H), jnp.float32),                 # c carry
                    pltpu.VMEM((t_chunk * bg, 4 * H), jnp.float32),   # hoisted gates
                ],
            ),
            compiler_params=pltpu.CompilerParams(
                # batch groups are independent (megacore on v7x); the time
                # recurrence is serial.
                dimension_semantics=("parallel", "arbitrary"),
                vmem_limit_bytes=vmem_limit,
            ),
        )(x_g, w_ih_k, w_hh_k, b_k)

    if _SINGLE_BUFFER_WEIGHTS[0]:
        try:
            y_g = run(single_buffer=True)
        except Exception:
            # pipeline_mode / Buffered(1) not supported here: fall back.
            _SINGLE_BUFFER_WEIGHTS[0] = False
            y_g = run(single_buffer=False)
    else:
        y_g = run(single_buffer=False)

    if n_groups == 1:
        return y_g.reshape(t_steps, B, H)
    return (y_g.reshape(n_groups, t_steps, bg, H)
            .transpose(1, 0, 2, 3).reshape(t_steps, B, H))


# ------------------------------ Listener forward ------------------------------
def listener_forward(x, params, *, batch_groups=None):
    """LAS Listener: layer 0 is a plain LSTM, layers >= 1 pyramid-reduce first.

    x: (B, T, F) batch-first f32 (like the PyTorch module).  Returns
    (B, T // 2**(n_layers-1), H) in f32.
    """
    B, T, F = x.shape
    B_pad = max(8, -(-B // 8) * 8)
    if batch_groups is None:
        batch_groups = 2 if (_num_tensorcores() >= 2 and B_pad % 16 == 0) else 1
    batch_groups = max(1, int(batch_groups))

    x = x.astype(jnp.bfloat16)
    if B_pad != B:
        x = jnp.pad(x, ((0, B_pad - B), (0, 0), (0, 0)))
    x_tm = jnp.transpose(x, (1, 0, 2))                  # (T, B_pad, F), once

    t_steps, feat = T, F
    for i, (w_ih, w_hh, b) in enumerate(params):
        if i != 0:
            # Pyramidal reduction in time-major layout: concat frames (2k,
            # 2k+1) along features -> (T//2, B, 2F); odd tail dropped.
            t2 = t_steps // 2
            xg = x_tm[: 2 * t2].reshape(t2, 2, B_pad, feat)
            x_tm = jnp.concatenate([xg[:, 0], xg[:, 1]], axis=-1)
            t_steps, feat = t2, 2 * feat
        x_tm = lstm_layer_pallas(x_tm, w_ih, w_hh, b, n_groups=batch_groups)
        feat = w_hh.shape[0]
    out = jnp.transpose(x_tm, (1, 0, 2)).astype(jnp.float32)   # (B_pad, T_out, H)
    return out[:B]


# ----------------------- pure-JAX reference (for sanity) -----------------------
def pyramid_reduce_ref(x):
    """torch: cat((x[:, 0::2], x[:, 1::2]), dim=-1) -> (B, T//2, 2F)."""
    B, T, F = x.shape
    T2 = T // 2
    return jnp.concatenate([x[:, 0:2 * T2:2, :], x[:, 1:2 * T2:2, :]], axis=-1)


def lstm_layer_ref(x, w_ih, w_hh, b):
    B, T, F = x.shape
    H = w_hh.shape[0]

    def step(carry, x_t):
        h, c = carry
        gates = x_t @ w_ih + h @ w_hh + b[0]
        i = jax.nn.sigmoid(gates[:, 0 * H:1 * H])
        f = jax.nn.sigmoid(gates[:, 1 * H:2 * H])
        g = jnp.tanh(gates[:, 2 * H:3 * H])
        o = jax.nn.sigmoid(gates[:, 3 * H:4 * H])
        c = f * c + i * g
        h = o * jnp.tanh(c)
        return (h, c), h

    init = (jnp.zeros((B, H), jnp.float32), jnp.zeros((B, H), jnp.float32))
    _, ys = jax.lax.scan(step, init, jnp.transpose(x, (1, 0, 2)))
    return jnp.transpose(ys, (1, 0, 2))


def listener_ref(x, params):
    for i, (w_ih, w_hh, b) in enumerate(params):
        if i != 0:
            x = pyramid_reduce_ref(x)
        x = lstm_layer_ref(x, w_ih, w_hh, b)
    return x


# --------------------------- parameter construction ---------------------------
def init_listener_params(key, n_dim_input, n_dim_output, n_count_layer):
    """Deterministic init matching torch.nn.LSTM shapes (single layer each).

    Layer 0 input dim = n_dim_input; layers >= 1 input dim = 2*n_dim_output.
    torch weight_ih (4H, F) is stored transposed as (F, 4H); b = b_ih + b_hh
    folded into one (1, 4H) vector.  Gate order i,f,g,o.
    """
    H = n_dim_output
    k = 1.0 / np.sqrt(H)
    params = []
    for layer in range(n_count_layer):
        F = n_dim_input if layer == 0 else 2 * n_dim_output
        key, k1, k2, k3, k4 = jax.random.split(key, 5)
        w_ih = jax.random.uniform(k1, (F, 4 * H), jnp.float32, -k, k)
        w_hh = jax.random.uniform(k2, (H, 4 * H), jnp.float32, -k, k)
        b_ih = jax.random.uniform(k3, (4 * H,), jnp.float32, -k, k)
        b_hh = jax.random.uniform(k4, (4 * H,), jnp.float32, -k, k)
        b = (b_ih + b_hh).reshape(1, 4 * H)
        params.append((w_ih, w_hh, b))
    return params


if __name__ == "__main__":
    # Shapes consistent with Listener(nDimInput=16, nDimOutput=32, nCountLayer=3).
    N_DIM_INPUT, N_DIM_OUTPUT, N_LAYERS = 16, 32, 3

    key = jax.random.PRNGKey(0)
    key, kx1, kx2 = jax.random.split(key, 3)
    params = init_listener_params(key, N_DIM_INPUT, N_DIM_OUTPUT, N_LAYERS)

    # Round inputs/params to bf16 precision up front so the bf16-storage
    # kernel and the f32 reference see the same quantized values; the kernel
    # keeps the recurrence/carries in f32 so drift stays small.
    def _r(a):
        return a.astype(jnp.bfloat16).astype(jnp.float32)

    params = [tuple(_r(p) for p in layer) for layer in params]

    # Case 1: B=16, T=8, forced 2 batch groups (exercises the megacore
    # batch-sharding path; also valid on single-TC chips) + multi-chunk carry.
    B1, T1 = 16, 8
    x1 = _r(jax.random.normal(kx1, (B1, T1, N_DIM_INPUT), jnp.float32))
    out1 = jax.block_until_ready(listener_forward(x1, params, batch_groups=2))
    assert out1.shape == (B1, T1 // (2 ** (N_LAYERS - 1)), N_DIM_OUTPUT), out1.shape
    ref1 = listener_ref(x1, params)
    np.testing.assert_allclose(np.asarray(out1), np.asarray(ref1),
                               rtol=2e-2, atol=2e-2)

    # Case 2: B=5 (padded to 8), T=13 — exercises batch padding and ragged
    # (non-divisible) time chunks in the pipeline.
    B2, T2 = 5, 13
    x2 = _r(jax.random.normal(kx2, (B2, T2, N_DIM_INPUT), jnp.float32))
    out2 = jax.block_until_ready(listener_forward(x2, params))
    assert out2.shape == (B2, (T2 // 2) // 2, N_DIM_OUTPUT), out2.shape
    ref2 = listener_ref(x2, params)
    np.testing.assert_allclose(np.asarray(out2), np.asarray(ref2),
                               rtol=2e-2, atol=2e-2)

    print("KERNEL_OK")
</pallas_src>

<mosaic_0001>
module attributes {stable_mosaic.version = 11 : i64} {
  func.func @_lstm_layer_kernel(%arg0: i32, %arg1: i32, %arg2: memref<1x16x16xbf16, #tpu.memory_space<vmem>>, %arg3: memref<16x128xbf16, #tpu.memory_space<vmem>>, %arg4: memref<32x128xbf16, #tpu.memory_space<vmem>>, %arg5: memref<1x128xf32, #tpu.memory_space<vmem>>, %arg6: memref<1x16x32xbf16, #tpu.memory_space<vmem>>, %arg7: memref<8x32xf32, #tpu.memory_space<vmem>>, %arg8: memref<8x32xf32, #tpu.memory_space<vmem>>, %arg9: memref<16x128xf32, #tpu.memory_space<vmem>>) attributes {dimension_semantics = [#tpu.dimension_semantics<parallel>, #tpu.dimension_semantics<arbitrary>], iteration_bounds = array<i64: 2, 4>, scalar_prefetch = 0 : i64, scratch_operands = 3 : i64, tpu.core_type = #tpu.core_type<tc>, window_params = [{transform_indices = @transform_0, window_bounds = array<i64: 1, 16, 16>}, {pipeline_mode = #tpu.pipeline_mode<synchronous>, transform_indices = @transform_1, window_bounds = array<i64: 16, 128>}, {pipeline_mode = #tpu.pipeline_mode<synchronous>, transform_indices = @transform_2, window_bounds = array<i64: 32, 128>}, {pipeline_mode = #tpu.pipeline_mode<synchronous>, transform_indices = @transform_3, window_bounds = array<i64: 1, 128>}, {transform_indices = @transform_4, window_bounds = array<i64: 1, 16, 32>}]} {
    %c0_i32 = arith.constant 0 : i32
    %0 = arith.cmpi eq, %arg1, %c0_i32 : i32
    %1 = arith.extui %0 : i1 to i32
    %c0_i32_0 = arith.constant 0 : i32
    %2 = arith.cmpi ne, %1, %c0_i32_0 : i32
    scf.if %2 {
      %cst_43 = arith.constant 0.000000e+00 : f32
      %85 = vector.broadcast %cst_43 : f32 to vector<8x32xf32>
      %c0_44 = arith.constant 0 : index
      %c0_45 = arith.constant 0 : index
      %86 = vector.load %arg7[%c0_44, %c0_45] : memref<8x32xf32, #tpu.memory_space<vmem>>, vector<8x32xf32>
      tpu.vector_store %arg7[%c0_44, %c0_45], %85 {strides = array<i32>} : memref<8x32xf32, #tpu.memory_space<vmem>>, vector<8x32xf32>,
      %cst_46 = arith.constant 0.000000e+00 : f32
      %87 = vector.broadcast %cst_46 : f32 to vector<8x32xf32>
      %c0_47 = arith.constant 0 : index
      %c0_48 = arith.constant 0 : index
      %88 = vector.load %arg8[%c0_47, %c0_48] : memref<8x32xf32, #tpu.memory_space<vmem>>, vector<8x32xf32>
      tpu.vector_store %arg8[%c0_47, %c0_48], %87 {strides = array<i32>} : memref<8x32xf32, #tpu.memory_space<vmem>>, vector<8x32xf32>,
    } else {
    }
    %c0 = arith.constant 0 : index
    %c0_1 = arith.constant 0 : index
    %c0_2 = arith.constant 0 : index
    %3 = vector.load %arg2[%c0, %c0_1, %c0_2] : memref<1x16x16xbf16, #tpu.memory_space<vmem>>, vector<1x16x16xbf16>
    %4 = vector.shape_cast %3 : vector<1x16x16xbf16> to vector<16x16xbf16>
    %c0_3 = arith.constant 0 : index
    %c0_4 = arith.constant 0 : index
    %5 = vector.load %arg3[%c0_3, %c0_4] : memref<16x128xbf16, #tpu.memory_space<vmem>>, vector<16x128xbf16>
    %cst = arith.constant dense<0.000000e+00> : vector<16x128xf32>
    %6 = tpu.matmul %4, %5, %cst {dimension_numbers = #tpu.dot_dimension_numbers<[1], [0], [0], [1], [0, 0, 1, 1], [], []>} : vector<16x16xbf16>, vector<16x128xbf16>, vector<16x128xf32> -> vector<16x128xf32>
    %c0_5 = arith.constant 0 : index
    %c0_6 = arith.constant 0 : index
    %7 = vector.load %arg5[%c0_5, %c0_6] : memref<1x128xf32, #tpu.memory_space<vmem>>, vector<1x128xf32>
    %8 = vector.broadcast %7 : vector<1x128xf32> to vector<16x128xf32>
    %9 = arith.addf %6, %8 : vector<16x128xf32>
    %c0_7 = arith.constant 0 : index
    %c0_8 = arith.constant 0 : index
    %10 = vector.load %arg9[%c0_7, %c0_8] : memref<16x128xf32, #tpu.memory_space<vmem>>, vector<16x128xf32>
    tpu.vector_store %arg9[%c0_7, %c0_8], %9 {strides = array<i32>} : memref<16x128xf32, #tpu.memory_space<vmem>>, vector<16x128xf32>,
    %c0_9 = arith.constant 0 : index
    %c0_10 = arith.constant 0 : index
    %11 = vector.load %arg7[%c0_9, %c0_10] : memref<8x32xf32, #tpu.memory_space<vmem>>, vector<8x32xf32>
    %c0_11 = arith.constant 0 : index
    %c0_12 = arith.constant 0 : index
    %12 = vector.load %arg8[%c0_11, %c0_12] : memref<8x32xf32, #tpu.memory_space<vmem>>, vector<8x32xf32>
    %c0_i32_13 = arith.constant 0 : i32
    %c8_i32 = arith.constant 8 : i32
    %13 = arith.muli %c0_i32_13, %c8_i32 : i32
    %14 = tpu.assume_multiple %13, 8 : i32
    %15 = arith.index_cast %14 : i32 to index
    %c0_14 = arith.constant 0 : index
    %16 = vector.load %arg9[%15, %c0_14] : memref<16x128xf32, #tpu.memory_space<vmem>>, vector<8x128xf32>
    %17 = arith.truncf %11 : vector<8x32xf32> to vector<8x32xbf16>
    %c0_15 = arith.constant 0 : index
    %c0_16 = arith.constant 0 : index
    %18 = vector.load %arg4[%c0_15, %c0_16] : memref<32x128xbf16, #tpu.memory_space<vmem>>, vector<32x128xbf16>
    %cst_17 = arith.constant dense<0.000000e+00> : vector<8x128xf32>
    %19 = tpu.matmul %17, %18, %cst_17 {dimension_numbers = #tpu.dot_dimension_numbers<[1], [0], [0], [1], [0, 0, 1, 1], [], []>} : vector<8x32xbf16>, vector<32x128xbf16>, vector<8x128xf32> -> vector<8x128xf32>
    %20 = arith.addf %16, %19 : vector<8x128xf32>
    %21 = math.tanh %20 : vector<8x128xf32>
    %22 = vector.extract_strided_slice %21 {offsets = [0, 0], sizes = [8, 32], strides = [1, 1]} : vector<8x128xf32> to vector<8x32xf32>
    %cst_18 = arith.constant 5.000000e-01 : f32
    %23 = vector.broadcast %cst_18 : f32 to vector<8x32xf32>
    %24 = arith.mulf %22, %23 : vector<8x32xf32>
    %cst_19 = arith.constant 5.000000e-01 : f32
    %25 = vector.broadcast %cst_19 : f32 to vector<8x32xf32>
    %26 = arith.addf %24, %25 : vector<8x32xf32>
    %27 = vector.extract_strided_slice %21 {offsets = [0, 32], sizes = [8, 32], strides = [1, 1]} : vector<8x128xf32> to vector<8x32xf32>
    %cst_20 = arith.constant 5.000000e-01 : f32
    %28 = vector.broadcast %cst_20 : f32 to vector<8x32xf32>
    %29 = arith.mulf %27, %28 : vector<8x32xf32>
    %cst_21 = arith.constant 5.000000e-01 : f32
    %30 = vector.broadcast %cst_21 : f32 to vector<8x32xf32>
    %31 = arith.addf %29, %30 : vector<8x32xf32>
    %32 = vector.extract_strided_slice %21 {offsets = [0, 64], sizes = [8, 32], strides = [1, 1]} : vector<8x128xf32> to vector<8x32xf32>
    %33 = vector.extract_strided_slice %21 {offsets = [0, 96], sizes = [8, 32], strides = [1, 1]} : vector<8x128xf32> to vector<8x32xf32>
    %cst_22 = arith.constant 5.000000e-01 : f32
    %34 = vector.broadcast %cst_22 : f32 to vector<8x32xf32>
    %35 = arith.mulf %33, %34 : vector<8x32xf32>
    %cst_23 = arith.constant 5.000000e-01 : f32
    %36 = vector.broadcast %cst_23 : f32 to vector<8x32xf32>
    %37 = arith.addf %35, %36 : vector<8x32xf32>
    %38 = arith.mulf %31, %12 : vector<8x32xf32>
    %39 = arith.mulf %26, %32 : vector<8x32xf32>
    %40 = arith.addf %38, %39 : vector<8x32xf32>
    %41 = math.tanh %40 : vector<8x32xf32>
    %42 = arith.mulf %37, %41 : vector<8x32xf32>
    %43 = arith.truncf %42 : vector<8x32xf32> to vector<8x32xbf16>
    %c0_24 = arith.constant 0 : index
    %44 = arith.index_cast %14 : i32 to index
    %c0_25 = arith.constant 0 : index
    %45 = vector.load %arg6[%c0_24, %44, %c0_25] : memref<1x16x32xbf16, #tpu.memory_space<vmem>>, vector<1x8x32xbf16>
    %46 = vector.shape_cast %45 : vector<1x8x32xbf16> to vector<8x32xbf16>
    %47 = vector.shape_cast %43 : vector<8x32xbf16> to vector<1x8x32xbf16>
    tpu.vector_store %arg6[%c0_24, %44, %c0_25], %47 {strides = array<i32>} : memref<1x16x32xbf16, #tpu.memory_space<vmem>>, vector<1x8x32xbf16>,
    %c1_i32 = arith.constant 1 : i32
    %c8_i32_26 = arith.constant 8 : i32
    %48 = arith.muli %c1_i32, %c8_i32_26 : i32
    %49 = tpu.assume_multiple %48, 8 : i32
    %50 = arith.index_cast %49 : i32 to index
    %c0_27 = arith.constant 0 : index
    %51 = vector.load %arg9[%50, %c0_27] : memref<16x128xf32, #tpu.memory_space<vmem>>, vector<8x128xf32>
    %52 = arith.truncf %42 : vector<8x32xf32> to vector<8x32xbf16>
    %c0_28 = arith.constant 0 : index
    %c0_29 = arith.constant 0 : index
    %53 = vector.load %arg4[%c0_28, %c0_29] : memref<32x128xbf16, #tpu.memory_space<vmem>>, vector<32x128xbf16>
    %cst_30 = arith.constant dense<0.000000e+00> : vector<8x128xf32>
    %54 = tpu.matmul %52, %53, %cst_30 {dimension_numbers = #tpu.dot_dimension_numbers<[1], [0], [0], [1], [0, 0, 1, 1], [], []>} : vector<8x32xbf16>, vector<32x128xbf16>, vector<8x128xf32> -> vector<8x128xf32>
    %55 = arith.addf %51, %54 : vector<8x128xf32>
    %56 = math.tanh %55 : vector<8x128xf32>
    %57 = vector.extract_strided_slice %56 {offsets = [0, 0], sizes = [8, 32], strides = [1, 1]} : vector<8x128xf32> to vector<8x32xf32>
    %cst_31 = arith.constant 5.000000e-01 : f32
    %58 = vector.broadcast %cst_31 : f32 to vector<8x32xf32>
    %59 = arith.mulf %57, %58 : vector<8x32xf32>
    %cst_32 = arith.constant 5.000000e-01 : f32
    %60 = vector.broadcast %cst_32 : f32 to vector<8x32xf32>
    %61 = arith.addf %59, %60 : vector<8x32xf32>
    %62 = vector.extract_strided_slice %56 {offsets = [0, 32], sizes = [8, 32], strides = [1, 1]} : vector<8x128xf32> to vector<8x32xf32>
    %cst_33 = arith.constant 5.000000e-01 : f32
    %63 = vector.broadcast %cst_33 : f32 to vector<8x32xf32>
    %64 = arith.mulf %62, %63 : vector<8x32xf32>
    %cst_34 = arith.constant 5.000000e-01 : f32
    %65 = vector.broadcast %cst_34 : f32 to vector<8x32xf32>
    %66 = arith.addf %64, %65 : vector<8x32xf32>
    %67 = vector.extract_strided_slice %56 {offsets = [0, 64], sizes = [8, 32], strides = [1, 1]} : vector<8x128xf32> to vector<8x32xf32>
    %68 = vector.extract_strided_slice %56 {offsets = [0, 96], sizes = [8, 32], strides = [1, 1]} : vector<8x128xf32> to vector<8x32xf32>
    %cst_35 = arith.constant 5.000000e-01 : f32
    %69 = vector.broadcast %cst_35 : f32 to vector<8x32xf32>
    %70 = arith.mulf %68, %69 : vector<8x32xf32>
    %cst_36 = arith.constant 5.000000e-01 : f32
    %71 = vector.broadcast %cst_36 : f32 to vector<8x32xf32>
    %72 = arith.addf %70, %71 : vector<8x32xf32>
    %73 = arith.mulf %66, %40 : vector<8x32xf32>
    %74 = arith.mulf %61, %67 : vector<8x32xf32>
    %75 = arith.addf %73, %74 : vector<8x32xf32>
    %76 = math.tanh %75 : vector<8x32xf32>
    %77 = arith.mulf %72, %76 : vector<8x32xf32>
    %78 = arith.truncf %77 : vector<8x32xf32> to vector<8x32xbf16>
    %c0_37 = arith.constant 0 : index
    %79 = arith.index_cast %49 : i32 to index
    %c0_38 = arith.constant 0 : index
    %80 = vector.load %arg6[%c0_37, %79, %c0_38] : memref<1x16x32xbf16, #tpu.memory_space<vmem>>, vector<1x8x32xbf16>
    %81 = vector.shape_cast %80 : vector<1x8x32xbf16> to vector<8x32xbf16>
    %82 = vector.shape_cast %78 : vector<8x32xbf16> to vector<1x8x32xbf16>
    tpu.vector_store %arg6[%c0_37, %79, %c0_38], %82 {strides = array<i32>} : memref<1x16x32xbf16, #tpu.memory_space<vmem>>, vector<1x8x32xbf16>,
    %c2_i32 = arith.constant 2 : i32
    %c0_39 = arith.constant 0 : index
    %c0_40 = arith.constant 0 : index
    %83 = vector.load %arg7[%c0_39, %c0_40] : memref<8x32xf32, #tpu.memory_space<vmem>>, vector<8x32xf32>
    tpu.vector_store %arg7[%c0_39, %c0_40], %77 {strides = array<i32>} : memref<8x32xf32, #tpu.memory_space<vmem>>, vector<8x32xf32>,
    %c0_41 = arith.constant 0 : index
    %c0_42 = arith.constant 0 : index
    %84 = vector.load %arg8[%c0_41, %c0_42] : memref<8x32xf32, #tpu.memory_space<vmem>>, vector<8x32xf32>
    tpu.vector_store %arg8[%c0_41, %c0_42], %75 {strides = array<i32>} : memref<8x32xf32, #tpu.memory_space<vmem>>, vector<8x32xf32>,
    return
  }
  func.func @transform_0(%arg0: i32, %arg1: i32) -> (i32, i32, i32) {
    %c0_i32 = arith.constant 0 : i32
    %c0_i32_0 = arith.constant 0 : i32
    return %arg0, %arg1, %c0_i32 : i32, i32, i32
  }
  func.func @transform_1(%arg0: i32, %arg1: i32) -> (i32, i32) {
    %c0_i32 = arith.constant 0 : i32
    %c0_i32_0 = arith.constant 0 : i32
    %c0_i32_1 = arith.constant 0 : i32
    return %c0_i32, %c0_i32_0 : i32, i32
  }
  func.func @transform_2(%arg0: i32, %arg1: i32) -> (i32, i32) {
    %c0_i32 = arith.constant 0 : i32
    %c0_i32_0 = arith.constant 0 : i32
    %c0_i32_1 = arith.constant 0 : i32
    return %c0_i32, %c0_i32_0 : i32, i32
  }
  func.func @transform_3(%arg0: i32, %arg1: i32) -> (i32, i32) {
    %c0_i32 = arith.constant 0 : i32
    %c0_i32_0 = arith.constant 0 : i32
    %c0_i32_1 = arith.constant 0 : i32
    return %c0_i32, %c0_i32_0 : i32, i32
  }
  func.func @transform_4(%arg0: i32, %arg1: i32) -> (i32, i32, i32) {
    %c0_i32 = arith.constant 0 : i32
    %c0_i32_0 = arith.constant 0 : i32
    return %arg0, %arg1, %c0_i32 : i32, i32, i32
  }
}

module attributes {stable_mosaic.version = 11 : i64} {
  func.func @_lstm_layer_kernel(%arg0: i32, %arg1: i32, %arg2: memref<1x16x16xbf16, #tpu.memory_space<vmem>>, %arg3: memref<16x128xbf16, #tpu.memory_space<vmem>>, %arg4: memref<32x128xbf16, #tpu.memory_space<vmem>>, %arg5: memref<1x128xf32, #tpu.memory_space<vmem>>, %arg6: memref<1x16x32xbf16, #tpu.memory_space<vmem>>, %arg7: memref<8x32xf32, #tpu.memory_space<vmem>>, %arg8: memref<8x32xf32, #tpu.memory_space<vmem>>, %arg9: memref<16x128xf32, #tpu.memory_space<vmem>>) attributes {dimension_semantics = [#tpu.dimension_semantics<parallel>, #tpu.dimension_semantics<arbitrary>], iteration_bounds = array<i64: 2, 4>, scalar_prefetch = 0 : i64, scratch_operands = 3 : i64, tpu.core_type = #tpu.core_type<tc>, window_params = [{transform_indices = @transform_0, window_bounds = array<i64: 1, 16, 16>}, {pipeline_mode = #tpu.pipeline_mode<synchronous>, transform_indices = @transform_1, window_bounds = array<i64: 16, 128>}, {pipeline_mode = #tpu.pipeline_mode<synchronous>, transform_indices = @transform_2, window_bounds = array<i64: 32, 128>}, {pipeline_mode = #tpu.pipeline_mode<synchronous>, transform_indices = @transform_3, window_bounds = array<i64: 1, 128>}, {transform_indices = @transform_4, window_bounds = array<i64: 1, 16, 32>}]} {
    %c0_i32 = arith.constant 0 : i32
    %0 = arith.cmpi eq, %arg1, %c0_i32 : i32
    %1 = arith.extui %0 : i1 to i32
    %c0_i32_0 = arith.constant 0 : i32
    %2 = arith.cmpi ne, %1, %c0_i32_0 : i32
    scf.if %2 {
      %cst_43 = arith.constant 0.000000e+00 : f32
      %85 = vector.broadcast %cst_43 : f32 to vector<8x32xf32>
      %c0_44 = arith.constant 0 : index
      %c0_45 = arith.constant 0 : index
      %86 = vector.load %arg7[%c0_44, %c0_45] : memref<8x32xf32, #tpu.memory_space<vmem>>, vector<8x32xf32>
      tpu.vector_store %arg7[%c0_44, %c0_45], %85 {strides = array<i32>} : memref<8x32xf32, #tpu.memory_space<vmem>>, vector<8x32xf32>,
      %cst_46 = arith.constant 0.000000e+00 : f32
      %87 = vector.broadcast %cst_46 : f32 to vector<8x32xf32>
      %c0_47 = arith.constant 0 : index
      %c0_48 = arith.constant 0 : index
      %88 = vector.load %arg8[%c0_47, %c0_48] : memref<8x32xf32, #tpu.memory_space<vmem>>, vector<8x32xf32>
      tpu.vector_store %arg8[%c0_47, %c0_48], %87 {strides = array<i32>} : memref<8x32xf32, #tpu.memory_space<vmem>>, vector<8x32xf32>,
    } else {
    }
    %c0 = arith.constant 0 : index
    %c0_1 = arith.constant 0 : index
    %c0_2 = arith.constant 0 : index
    %3 = vector.load %arg2[%c0, %c0_1, %c0_2] : memref<1x16x16xbf16, #tpu.memory_space<vmem>>, vector<1x16x16xbf16>
    %4 = vector.shape_cast %3 : vector<1x16x16xbf16> to vector<16x16xbf16>
    %c0_3 = arith.constant 0 : index
    %c0_4 = arith.constant 0 : index
    %5 = vector.load %arg3[%c0_3, %c0_4] : memref<16x128xbf16, #tpu.memory_space<vmem>>, vector<16x128xbf16>
    %cst = arith.constant dense<0.000000e+00> : vector<16x128xf32>
    %6 = tpu.matmul %4, %5, %cst {dimension_numbers = #tpu.dot_dimension_numbers<[1], [0], [0], [1], [0, 0, 1, 1], [], []>} : vector<16x16xbf16>, vector<16x128xbf16>, vector<16x128xf32> -> vector<16x128xf32>
    %c0_5 = arith.constant 0 : index
    %c0_6 = arith.constant 0 : index
    %7 = vector.load %arg5[%c0_5, %c0_6] : memref<1x128xf32, #tpu.memory_space<vmem>>, vector<1x128xf32>
    %8 = vector.broadcast %7 : vector<1x128xf32> to vector<16x128xf32>
    %9 = arith.addf %6, %8 : vector<16x128xf32>
    %c0_7 = arith.constant 0 : index
    %c0_8 = arith.constant 0 : index
    %10 = vector.load %arg9[%c0_7, %c0_8] : memref<16x128xf32, #tpu.memory_space<vmem>>, vector<16x128xf32>
    tpu.vector_store %arg9[%c0_7, %c0_8], %9 {strides = array<i32>} : memref<16x128xf32, #tpu.memory_space<vmem>>, vector<16x128xf32>,
    %c0_9 = arith.constant 0 : index
    %c0_10 = arith.constant 0 : index
    %11 = vector.load %arg7[%c0_9, %c0_10] : memref<8x32xf32, #tpu.memory_space<vmem>>, vector<8x32xf32>
    %c0_11 = arith.constant 0 : index
    %c0_12 = arith.constant 0 : index
    %12 = vector.load %arg8[%c0_11, %c0_12] : memref<8x32xf32, #tpu.memory_space<vmem>>, vector<8x32xf32>
    %c0_i32_13 = arith.constant 0 : i32
    %c8_i32 = arith.constant 8 : i32
    %13 = arith.muli %c0_i32_13, %c8_i32 : i32
    %14 = tpu.assume_multiple %13, 8 : i32
    %15 = arith.index_cast %14 : i32 to index
    %c0_14 = arith.constant 0 : index
    %16 = vector.load %arg9[%15, %c0_14] : memref<16x128xf32, #tpu.memory_space<vmem>>, vector<8x128xf32>
    %17 = arith.truncf %11 : vector<8x32xf32> to vector<8x32xbf16>
    %c0_15 = arith.constant 0 : index
    %c0_16 = arith.constant 0 : index
    %18 = vector.load %arg4[%c0_15, %c0_16] : memref<32x128xbf16, #tpu.memory_space<vmem>>, vector<32x128xbf16>
    %cst_17 = arith.constant dense<0.000000e+00> : vector<8x128xf32>
    %19 = tpu.matmul %17, %18, %cst_17 {dimension_numbers = #tpu.dot_dimension_numbers<[1], [0], [0], [1], [0, 0, 1, 1], [], []>} : vector<8x32xbf16>, vector<32x128xbf16>, vector<8x128xf32> -> vector<8x128xf32>
    %20 = arith.addf %16, %19 : vector<8x128xf32>
    %21 = math.tanh %20 : vector<8x128xf32>
    %22 = vector.extract_strided_slice %21 {offsets = [0, 0], sizes = [8, 32], strides = [1, 1]} : vector<8x128xf32> to vector<8x32xf32>
    %cst_18 = arith.constant 5.000000e-01 : f32
    %23 = vector.broadcast %cst_18 : f32 to vector<8x32xf32>
    %24 = arith.mulf %22, %23 : vector<8x32xf32>
    %cst_19 = arith.constant 5.000000e-01 : f32
    %25 = vector.broadcast %cst_19 : f32 to vector<8x32xf32>
    %26 = arith.addf %24, %25 : vector<8x32xf32>
    %27 = vector.extract_strided_slice %21 {offsets = [0, 32], sizes = [8, 32], strides = [1, 1]} : vector<8x128xf32> to vector<8x32xf32>
    %cst_20 = arith.constant 5.000000e-01 : f32
    %28 = vector.broadcast %cst_20 : f32 to vector<8x32xf32>
    %29 = arith.mulf %27, %28 : vector<8x32xf32>
    %cst_21 = arith.constant 5.000000e-01 : f32
    %30 = vector.broadcast %cst_21 : f32 to vector<8x32xf32>
    %31 = arith.addf %29, %30 : vector<8x32xf32>
    %32 = vector.extract_strided_slice %21 {offsets = [0, 64], sizes = [8, 32], strides = [1, 1]} : vector<8x128xf32> to vector<8x32xf32>
    %33 = vector.extract_strided_slice %21 {offsets = [0, 96], sizes = [8, 32], strides = [1, 1]} : vector<8x128xf32> to vector<8x32xf32>
    %cst_22 = arith.constant 5.000000e-01 : f32
    %34 = vector.broadcast %cst_22 : f32 to vector<8x32xf32>
    %35 = arith.mulf %33, %34 : vector<8x32xf32>
    %cst_23 = arith.constant 5.000000e-01 : f32
    %36 = vector.broadcast %cst_23 : f32 to vector<8x32xf32>
    %37 = arith.addf %35, %36 : vector<8x32xf32>
    %38 = arith.mulf %31, %12 : vector<8x32xf32>
    %39 = arith.mulf %26, %32 : vector<8x32xf32>
    %40 = arith.addf %38, %39 : vector<8x32xf32>
    %41 = math.tanh %40 : vector<8x32xf32>
    %42 = arith.mulf %37, %41 : vector<8x32xf32>
    %43 = arith.truncf %42 : vector<8x32xf32> to vector<8x32xbf16>
    %c0_24 = arith.constant 0 : index
    %44 = arith.index_cast %14 : i32 to index
    %c0_25 = arith.constant 0 : index
    %45 = vector.load %arg6[%c0_24, %44, %c0_25] : memref<1x16x32xbf16, #tpu.memory_space<vmem>>, vector<1x8x32xbf16>
    %46 = vector.shape_cast %45 : vector<1x8x32xbf16> to vector<8x32xbf16>
    %47 = vector.shape_cast %43 : vector<8x32xbf16> to vector<1x8x32xbf16>
    tpu.vector_store %arg6[%c0_24, %44, %c0_25], %47 {strides = array<i32>} : memref<1x16x32xbf16, #tpu.memory_space<vmem>>, vector<1x8x32xbf16>,
    %c1_i32 = arith.constant 1 : i32
    %c8_i32_26 = arith.constant 8 : i32
    %48 = arith.muli %c1_i32, %c8_i32_26 : i32
    %49 = tpu.assume_multiple %48, 8 : i32
    %50 = arith.index_cast %49 : i32 to index
    %c0_27 = arith.constant 0 : index
    %51 = vector.load %arg9[%50, %c0_27] : memref<16x128xf32, #tpu.memory_space<vmem>>, vector<8x128xf32>
    %52 = arith.truncf %42 : vector<8x32xf32> to vector<8x32xbf16>
    %c0_28 = arith.constant 0 : index
    %c0_29 = arith.constant 0 : index
    %53 = vector.load %arg4[%c0_28, %c0_29] : memref<32x128xbf16, #tpu.memory_space<vmem>>, vector<32x128xbf16>
    %cst_30 = arith.constant dense<0.000000e+00> : vector<8x128xf32>
    %54 = tpu.matmul %52, %53, %cst_30 {dimension_numbers = #tpu.dot_dimension_numbers<[1], [0], [0], [1], [0, 0, 1, 1], [], []>} : vector<8x32xbf16>, vector<32x128xbf16>, vector<8x128xf32> -> vector<8x128xf32>
    %55 = arith.addf %51, %54 : vector<8x128xf32>
    %56 = math.tanh %55 : vector<8x128xf32>
    %57 = vector.extract_strided_slice %56 {offsets = [0, 0], sizes = [8, 32], strides = [1, 1]} : vector<8x128xf32> to vector<8x32xf32>
    %cst_31 = arith.constant 5.000000e-01 : f32
    %58 = vector.broadcast %cst_31 : f32 to vector<8x32xf32>
    %59 = arith.mulf %57, %58 : vector<8x32xf32>
    %cst_32 = arith.constant 5.000000e-01 : f32
    %60 = vector.broadcast %cst_32 : f32 to vector<8x32xf32>
    %61 = arith.addf %59, %60 : vector<8x32xf32>
    %62 = vector.extract_strided_slice %56 {offsets = [0, 32], sizes = [8, 32], strides = [1, 1]} : vector<8x128xf32> to vector<8x32xf32>
    %cst_33 = arith.constant 5.000000e-01 : f32
    %63 = vector.broadcast %cst_33 : f32 to vector<8x32xf32>
    %64 = arith.mulf %62, %63 : vector<8x32xf32>
    %cst_34 = arith.constant 5.000000e-01 : f32
    %65 = vector.broadcast %cst_34 : f32 to vector<8x32xf32>
    %66 = arith.addf %64, %65 : vector<8x32xf32>
    %67 = vector.extract_strided_slice %56 {offsets = [0, 64], sizes = [8, 32], strides = [1, 1]} : vector<8x128xf32> to vector<8x32xf32>
    %68 = vector.extract_strided_slice %56 {offsets = [0, 96], sizes = [8, 32], strides = [1, 1]} : vector<8x128xf32> to vector<8x32xf32>
    %cst_35 = arith.constant 5.000000e-01 : f32
    %69 = vector.broadcast %cst_35 : f32 to vector<8x32xf32>
    %70 = arith.mulf %68, %69 : vector<8x32xf32>
    %cst_36 = arith.constant 5.000000e-01 : f32
    %71 = vector.broadcast %cst_36 : f32 to vector<8x32xf32>
    %72 = arith.addf %70, %71 : vector<8x32xf32>
    %73 = arith.mulf %66, %40 : vector<8x32xf32>
    %74 = arith.mulf %61, %67 : vector<8x32xf32>
    %75 = arith.addf %73, %74 : vector<8x32xf32>
    %76 = math.tanh %75 : vector<8x32xf32>
    %77 = arith.mulf %72, %76 : vector<8x32xf32>
    %78 = arith.truncf %77 : vector<8x32xf32> to vector<8x32xbf16>
    %c0_37 = arith.constant 0 : index
    %79 = arith.index_cast %49 : i32 to index
    %c0_38 = arith.constant 0 : index
    %80 = vector.load %arg6[%c0_37, %79, %c0_38] : memref<1x16x32xbf16, #tpu.memory_space<vmem>>, vector<1x8x32xbf16>
    %81 = vector.shape_cast %80 : vector<1x8x32xbf16> to vector<8x32xbf16>
    %82 = vector.shape_cast %78 : vector<8x32xbf16> to vector<1x8x32xbf16>
    tpu.vector_store %arg6[%c0_37, %79, %c0_38], %82 {strides = array<i32>} : memref<1x16x32xbf16, #tpu.memory_space<vmem>>, vector<1x8x32xbf16>,
    %c2_i32 = arith.constant 2 : i32
    %c0_39 = arith.constant 0 : index
    %c0_40 = arith.constant 0 : index
    %83 = vector.load %arg7[%c0_39, %c0_40] : memref<8x32xf32, #tpu.memory_space<vmem>>, vector<8x32xf32>
    tpu.vector_store %arg7[%c0_39, %c0_40], %77 {strides = array<i32>} : memref<8x32xf32, #tpu.memory_space<vmem>>, vector<8x32xf32>,
    %c0_41 = arith.constant 0 : index
    %c0_42 = arith.constant 0 : index
    %84 = vector.load %arg8[%c0_41, %c0_42] : memref<8x32xf32, #tpu.memory_space<vmem>>, vector<8x32xf32>
    tpu.vector_store %arg8[%c0_41, %c0_42], %75 {strides = array<i32>} : memref<8x32xf32, #tpu.memory_space<vmem>>, vector<8x32xf32>,
    return
  }
  func.func @transform_0(%arg0: i32, %arg1: i32) -> (i32, i32, i32) {
    %c0_i32 = arith.constant 0 : i32
    %c0_i32_0 = arith.constant 0 : i32
    return %arg0, %arg1, %c0_i32 : i32, i32, i32
  }
  func.func @transform_1(%arg0: i32, %arg1: i32) -> (i32, i32) {
    %c0_i32 = arith.constant 0 : i32
    %c0_i32_0 = arith.constant 0 : i32
    %c0_i32_1 = arith.constant 0 : i32
    return %c0_i32, %c0_i32_0 : i32, i32
  }
  func.func @transform_2(%arg0: i32, %arg1: i32) -> (i32, i32) {
    %c0_i32 = arith.constant 0 : i32
    %c0_i32_0 = arith.constant 0 : i32
    %c0_i32_1 = arith.constant 0 : i32
    return %c0_i32, %c0_i32_0 : i32, i32
  }
  func.func @transform_3(%arg0: i32, %arg1: i32) -> (i32, i32) {
    %c0_i32 = arith.constant 0 : i32
    %c0_i32_0 = arith.constant 0 : i32
    %c0_i32_1 = arith.constant 0 : i32
    return %c0_i32, %c0_i32_0 : i32, i32
  }
  func.func @transform_4(%arg0: i32, %arg1: i32) -> (i32, i32, i32) {
    %c0_i32 = arith.constant 0 : i32
    %c0_i32_0 = arith.constant 0 : i32
    return %arg0, %arg1, %c0_i32 : i32, i32, i32
  }
}

</mosaic_0001>

<bundles_post_ra>
// kernel: tpu_custom_call.1
= control target key start
LH: loop header
LB: loop body
LE: loop exit
PB: predicated region body
PF: predicated region fallthrough
CT: control target
= control target key end

     0   :  { %s795_s15 = smov 0   ;;  %s797_s16 = smov 0   ;;  %s885_s0 = inlined_call_operand.vmem [shape: bf16[2,64,16], index: 0, kind: input, shape index: {}]   ;;  %s886_s1 = inlined_call_operand.vmem [shape: bf16[16,128], index: 1, kind: input, shape index: {}]   ;;  %s887_s2 = inlined_call_operand.vmem [shape: bf16[32,128], index: 2, kind: input, shape index: {}]   ;;  %s888_s3 = inlined_call_operand.vmem [shape: f32[1,128], index: 3, kind: input, shape index: {}]   ;;  %s889_s4 = inlined_call_operand.vmem [shape: bf16[2,64,32], index: 4, kind: output, shape index: {}]  }
   0x1   :  { %s799_s17 = smov 0   ;;  %s801_s18 = smov 0  }
   0x2   :  { %s803_s19 = smov 0  }
   0x3 LB: > { %s23_s20 = sadd.s32 1, %s754_s17  ;;  %s26_s21 = sadd.s32 1, %s758_s18  ;;  %s762_s19 = sphi %s803_s19, %s14_s19   ;;  %s758_s18 = sphi %s801_s18, %s893_s18   ;;  %s754_s17 = sphi %s799_s17, %s892_s17   ;;  %s750_s16 = sphi %s797_s16, %s891_s16   ;;  %s746_s15 = sphi %s795_s15, %s890_s15  }
   0x4   : > { %p24_p0 = scmp.ge.s32.totalorder %s23_s20, 4  ;;  %p609_p1 = scmp.ge.s32.totalorder %s762_s19, 1 }
   0x5   : > { %p183_p2 = scmp.lt.s32.totalorder %s762_s19, 9 }
   0x6   : > { %s895_s20 = smov (%p24_p0, %s23_s20), 0  ;;  %s897_s21 = smov (!%p24_p0, %s26_s21), %s758_s18 }
   0x7   : > { %p184_p3 = pnand %p609_p1, %p183_p2  ;;  %p28_p4 = scmp.ge.s32.totalorder %s897_s21, 2 }
   0x8   : > { %s610_s22 = sshll.u32 (!%p184_p3), %s746_s15, 1  ;;  %p218_p5 = scmp.lt.s32.totalorder (!%p184_p3), %s750_s16, 1 }
   0x9   : > { %s899_s21 = smov (%p28_p4, %s897_s21), 0  ;;  %187 = sbr.rel (%p184_p3) target bundleno = 1447 (0x5a7), region = 36 }
   0xa   : > { %p220_p6 = scmp.lt.s32.totalorder (!%p184_p3), %s610_s22, 7  ;;  %p616_p7 = scmp.ne.s32.totalorder (!%p184_p3), %s746_s15, 0 }
  0x10   : > { %s901_s16 = smov (!%p218_p5, %s750_s16), 1  ;;  %s903_s22 = smov (!%p220_p6, %s610_s22), 7 }
  0x11   : > { %s611_s23 = sshll.u32 %s901_s16, 3  ;;  %241 = sbr.rel (%p616_p7) target bundleno = 24 (0x18), region = 40  ;;  %vm242_vm0 = vcmask (!%p616_p7), 261120   ;;  %v764_v0 = vmov (!%p616_p7), 0.0  }
  0x12   : > { %s223_s24 = sadd.s32 %s611_s23, %s903_s22  ;;  %243 = vst.msk [vmem:[#allocation2] sm:$0xff] (!%p616_p7), %vm242_vm0, %v764_v0  ;;  %244 = vst.msk [vmem:[#allocation3] sm:$0xff] (!%p616_p7), %vm242_vm0, %v764_v0 }
  0x13   : > { %s612_s25 = sshll.u32 %s223_s24, 2 }
  0x14   : > { %s225_s28 = scalar_lea.vmem %s885_s0, %s612_s25  ;;  %s831_s5 = scalar_lea.vmem %s889_s4, %s612_s25 }
  0x18 PF: > { %v710_v1 = vld [vmem:[%s886_s1] sm:$0xff]   ;;  %v765_v2 = vmov 0.0   ;;  %vm766_vm1 = vmmov 0   ;;  %vm267_vm2 = vcmask 130048   ;;  %v713_v5 = vld [vmem:[%s887_s2 + $0x8] sm:$0xff]   ;;  %vm334_vm3 = vcmask 261120  }
  0x19   : > { %642 = vmatprep.subr.bf16.mxu0 %v765_v2  ;;  %648 = vmatprep.subr.bf16.mxu1 %v765_v2  ;;  %v711_v3 = vld [vmem:[%s887_s2] sm:$0xff]   ;;  %s767_s14 = smov 64   ;;  %v315_v21 = vld [vmem:[#allocation3] sm:$0xff]  ;;  %s768_s15 = smov 32   ;;  %vm410_vm4 = vcmask 257024  }
  0x1a   : > { %643 = vmatpush3.bf16.msra.mxu0 %v710_v1  ;;  %644 = vmatprep.mubr.msk.bf16.mxu0 %vm766_vm1, %v765_v2  ;;  %v712_v4 = vld [vmem:[%s225_s28] sm:$0xff]   ;;  %v715_v31 = vld [vmem:[%s887_s2 + $0x8] sm:$0xff]   ;;  %s769_s25 = smov 96  }
  0x1b   : > { %649 = vmatpush3.bf16.msra.mxu1 %v711_v3  ;;  %652 = vmatprep.mubr.msk.bf16.mxu1 %vm766_vm1, %v765_v2  ;;  %v314_v6 = vld [vmem:[#allocation2] sm:$0xff] }
  0x1c   : > { %650 = vmatprep.subr.bf16.mxu1 %v765_v2  ;;  %656 = vmatprep.subr.bf16.mxu0 %v765_v2  ;;  %v317_v7 = vpack.c.bf16 %v314_v6, %v314_v6  ;;  %v617_v8 = vld [vmem:[%s888_s3] ss:$0 sm:$0xff] }
  0x1d   : > { %645 = vmatmul.mubr.msk.bf16.vlgmr.msra.gmra.mrb[0].mxu0 %vm267_vm2, %v712_v4  ;;  %v714_v30 = vld [vmem:[%s887_s2] sm:$0xff]  }
  0x1e   : > { %660 = vmatprep.mubr.msk.bf16.mxu0 %vm766_vm1, %v765_v2  ;;  %657 = vmatpush3.bf16.msra.mxu0 %v714_v30 }
  0x1f   : > { %651 = vmatpush3.bf16.msra.mxu1 %v713_v5  ;;  %658 = vmatprep.subr.bf16.mxu0 %v765_v2 }
  0x22   : > { %653 = vmatmul.mubr.msk.bf16.vlgmr.msra.gmra.mrb[0].mxu1 %vm334_vm3, %v317_v7  ;;  %659 = vmatpush3.bf16.msra.mxu0 %v715_v31 }
  0xf0   : > { %v305_v9 = vpop.f32.mrb[0].mxu0 }
  0xf1   : > { %v646_v10 = vpop.f32.mrb[1].mxu0  ;;  %v306_v11 = vadd.f32 %v617_v8, %v305_v9 }
  0xf2   : > { %v308_v12 = vpop.f32.mrb[2].mxu0 }
  0xf3   : > { %v309_v13 = vadd.f32 %v617_v8, %v308_v12  ;;  %v647_v14 = vpop.f32.mrb[3].mxu0 }
  0xf5   : > { %v372_v15 = vpop.f32.mrb[0].mxu1 }
  0xf6   : > { %v378_v16 = vadd.f32 %v372_v15, %v306_v11  ;;  %v654_v17 = vpop.f32.mrb[1].mxu1 }
  0xf7   : > { %v375_v18 = vpop.f32.mrb[2].mxu1 }
  0xf8   : > { %716 = vtanh.f32 %v378_v16  ;;  %v655_v19 = vpop.f32.mrb[3].mxu1 }
 0x102   : > { %v717_v20 = vpop.eup %716 }
 0x103   : > { %388 = vrot.lane.b32.xlu0 %v717_v20, %s767_s14  ;;  %v380_v22 = vmul.f32 0.5, %v717_v20 }
 0x105   : > { %v381_v23 = vadd.f32 0.5, %v380_v22 }
 0x107   : > { %383 = vrot.lane.b32.xlu0 %v315_v21, %s768_s15 }
 0x175   : > { %v389_v24 = vpop.permute.xlu0 %388 }
 0x176   : > { %v391_v25 = vmul.f32 %v389_v24, %v381_v23 }
 0x178   : > { %393 = vrot.lane.b32.xlu1 %v391_v25, %s768_s15 }
 0x179   : > { %v384_v26 = vpop.permute.xlu0 %383 }
 0x17a   : > { %v386_v27 = vmul.f32 %v384_v26, %v381_v23 }
 0x1ea   : > { %v394_v28 = vpop.permute.xlu1 %393 }
 0x1eb   : > { %v396_v29 = vadd.f32 %v394_v28, %v386_v27 }
 0x1ed   : > { %718 = vtanh.f32 %v396_v29 }
 0x1f7   : > { %v719_v32 = vpop.eup %718 }
 0x1f8   : > { %399 = vrot.lane.b32.xlu1 %v719_v32, %s767_s14 }
 0x26a   : > { %v400_v33 = vpop.permute.xlu1 %399 }
 0x26b   : > { %v402_v34 = vmul.f32 %v400_v33, %v381_v23 }
 0x26d   : > { %v403_v35 = vpack.c.bf16 %v402_v34, %v402_v34 }
 0x26f   : > { %418 = vrot.lane.b32.xlu0 %v403_v35, %s768_s15 }
 0x2e1   : > { %v419_v36 = vpop.permute.xlu0 %418 }
 0x2e2   : > { %661 = vmatmul.mubr.msk.bf16.vlgmr.msra.gmra.mrb[4].mxu0 %vm334_vm3, %v419_v36 }
 0x3b5   : > { %v469_v37 = vpop.f32.mrb[4].mxu0 }
 0x3b6   : > { %v475_v38 = vadd.f32 %v469_v37, %v309_v13  ;;  %v662_v39 = vpop.f32.mrb[5].mxu0 }
 0x3b7   : > { %v472_v40 = vpop.f32.mrb[6].mxu0 }
 0x3b8   : > { %720 = vtanh.f32 %v475_v38  ;;  %v663_v41 = vpop.f32.mrb[7].mxu0 }
 0x3c2   : > { %v721_v42 = vpop.eup %720 }
 0x3c3   : > { %481 = vrot.lane.b32.xlu1 %v721_v42, %s767_s14  ;;  %v477_v43 = vmul.f32 0.5, %v721_v42 }
 0x3c5   : > { %v478_v44 = vadd.f32 0.5, %v477_v43 }
 0x3c7   : > { %v479_v47 = vmul.f32 %v478_v44, %v396_v29 }
 0x435   : > { %v482_v45 = vpop.permute.xlu1 %481 }
 0x436   : > { %v484_v46 = vmul.f32 %v482_v45, %v478_v44 }
 0x438   : > { %486 = vrot.lane.b32.xlu0 %v484_v46, %s768_s15 }
 0x43c   : > { %407 = vrot.lane.b32.xlu0 %v403_v35, %s768_s15 }
 0x4aa   : > { %v487_v48 = vpop.permute.xlu0 %486 }
 0x4ab   : > { %v489_v49 = vadd.f32 %v487_v48, %v479_v47 }
 0x4ad   : > { %722 = vtanh.f32 %v489_v49 }
 0x4ae   : > { %v408_v50 = vpop.permute.xlu0 %407 }
 0x4af   : > { %411 = vst.msk [vmem:[%s831_s5] sm:$0xf] %vm410_vm4, %v408_v50 }
 0x4b7   : > { %v723_v51 = vpop.eup %722 }
 0x4b8   : > { %492 = vrot.lane.b32.xlu1 %v723_v51, %s767_s14 }
 0x52a   : > { %v493_v52 = vpop.permute.xlu1 %492 }
 0x52b   : > { %v495_v53 = vmul.f32 %v493_v52, %v478_v44 }
 0x52d   : > { %v633_v54 = vpack.c.bf16 %v495_v53, %v495_v53  ;;  %506 = vrot.lane.b32.xlu0 %v495_v53, %s768_s15 }
 0x52f   : > { %500 = vrot.lane.b32.xlu1 %v633_v54, %s768_s15 }
 0x533   : > { %511 = vrot.lane.b32.xlu1 %v489_v49, %s769_s25 }
 0x59f   : > { %v507_v55 = vpop.permute.xlu0 %506 }
 0x5a0   : > { %509 = vst.msk [vmem:[#allocation2] sm:$0xff] %vm334_vm3, %v507_v55 }
 0x5a1   : > { %v501_v56 = vpop.permute.xlu1 %500 }
 0x5a2   : > { %629 = vst.msk [vmem:[%s831_s5 + $0x4] sm:$0xf] %vm410_vm4, %v501_v56 }
 0x5a5   : > { %v512_v57 = vpop.permute.xlu1 %511 }
 0x5a6   : > { %514 = vst.msk [vmem:[#allocation3] sm:$0xff] %vm334_vm3, %v512_v57 }
 0x5a7 PF: > { %s14_s19 = sadd.s32 1, %s762_s19   ;;  %s890_s15 = smov %s754_s17 }
 0x5a8   : > { %p11_p8 = scmp.ge.s32.totalorder %s14_s19, 10   ;;  %s891_s16 = smov %s758_s18 }
 0x5a9   : > { %s892_s17 = smov %s895_s20  ;;  %s893_s18 = smov %s899_s21 }
 0x5aa   :  { %13 = sbr.rel (!%p11_p8) target bundleno = 3 (0x3), region = 72 }

// kernel: tpu_custom_call.1
= control target key start
LH: loop header
LB: loop body
LE: loop exit
PB: predicated region body
PF: predicated region fallthrough
CT: control target
= control target key end

     0   :  { %s795_s15 = smov 0   ;;  %s797_s16 = smov 0   ;;  %s885_s0 = inlined_call_operand.vmem [shape: bf16[2,64,16], index: 0, kind: input, shape index: {}]   ;;  %s886_s1 = inlined_call_operand.vmem [shape: bf16[16,128], index: 1, kind: input, shape index: {}]   ;;  %s887_s2 = inlined_call_operand.vmem [shape: bf16[32,128], index: 2, kind: input, shape index: {}]   ;;  %s888_s3 = inlined_call_operand.vmem [shape: f32[1,128], index: 3, kind: input, shape index: {}]   ;;  %s889_s4 = inlined_call_operand.vmem [shape: bf16[2,64,32], index: 4, kind: output, shape index: {}]  }
   0x1   :  { %s799_s17 = smov 0   ;;  %s801_s18 = smov 0  }
   0x2   :  { %s803_s19 = smov 0  }
   0x3 LB: > { %s23_s20 = sadd.s32 1, %s754_s17  ;;  %s26_s21 = sadd.s32 1, %s758_s18  ;;  %s762_s19 = sphi %s803_s19, %s14_s19   ;;  %s758_s18 = sphi %s801_s18, %s893_s18   ;;  %s754_s17 = sphi %s799_s17, %s892_s17   ;;  %s750_s16 = sphi %s797_s16, %s891_s16   ;;  %s746_s15 = sphi %s795_s15, %s890_s15  }
   0x4   : > { %p24_p0 = scmp.ge.s32.totalorder %s23_s20, 4  ;;  %p609_p1 = scmp.ge.s32.totalorder %s762_s19, 1 }
   0x5   : > { %p183_p2 = scmp.lt.s32.totalorder %s762_s19, 9 }
   0x6   : > { %s895_s20 = smov (%p24_p0, %s23_s20), 0  ;;  %s897_s21 = smov (!%p24_p0, %s26_s21), %s758_s18 }
   0x7   : > { %p184_p3 = pnand %p609_p1, %p183_p2  ;;  %p28_p4 = scmp.ge.s32.totalorder %s897_s21, 2 }
   0x8   : > { %s610_s22 = sshll.u32 (!%p184_p3), %s746_s15, 1  ;;  %p218_p5 = scmp.lt.s32.totalorder (!%p184_p3), %s750_s16, 1 }
   0x9   : > { %s899_s21 = smov (%p28_p4, %s897_s21), 0  ;;  %187 = sbr.rel (%p184_p3) target bundleno = 1447 (0x5a7), region = 36 }
   0xa   : > { %p220_p6 = scmp.lt.s32.totalorder (!%p184_p3), %s610_s22, 7  ;;  %p616_p7 = scmp.ne.s32.totalorder (!%p184_p3), %s746_s15, 0 }
  0x10   : > { %s901_s16 = smov (!%p218_p5, %s750_s16), 1  ;;  %s903_s22 = smov (!%p220_p6, %s610_s22), 7 }
  0x11   : > { %s611_s23 = sshll.u32 %s901_s16, 3  ;;  %241 = sbr.rel (%p616_p7) target bundleno = 24 (0x18), region = 40  ;;  %vm242_vm0 = vcmask (!%p616_p7), 261120   ;;  %v764_v0 = vmov (!%p616_p7), 0.0  }
  0x12   : > { %s223_s24 = sadd.s32 %s611_s23, %s903_s22  ;;  %243 = vst.msk [vmem:[#allocation2] sm:$0xff] (!%p616_p7), %vm242_vm0, %v764_v0  ;;  %244 = vst.msk [vmem:[#allocation3] sm:$0xff] (!%p616_p7), %vm242_vm0, %v764_v0 }
  0x13   : > { %s612_s25 = sshll.u32 %s223_s24, 2 }
  0x14   : > { %s225_s28 = scalar_lea.vmem %s885_s0, %s612_s25  ;;  %s831_s5 = scalar_lea.vmem %s889_s4, %s612_s25 }
  0x18 PF: > { %v710_v1 = vld [vmem:[%s886_s1] sm:$0xff]   ;;  %v765_v2 = vmov 0.0   ;;  %vm766_vm1 = vmmov 0   ;;  %vm267_vm2 = vcmask 130048   ;;  %v713_v5 = vld [vmem:[%s887_s2 + $0x8] sm:$0xff]   ;;  %vm334_vm3 = vcmask 261120  }
  0x19   : > { %642 = vmatprep.subr.bf16.mxu0 %v765_v2  ;;  %648 = vmatprep.subr.bf16.mxu1 %v765_v2  ;;  %v711_v3 = vld [vmem:[%s887_s2] sm:$0xff]   ;;  %s767_s14 = smov 64   ;;  %v315_v21 = vld [vmem:[#allocation3] sm:$0xff]  ;;  %s768_s15 = smov 32   ;;  %vm410_vm4 = vcmask 257024  }
  0x1a   : > { %643 = vmatpush3.bf16.msra.mxu0 %v710_v1  ;;  %644 = vmatprep.mubr.msk.bf16.mxu0 %vm766_vm1, %v765_v2  ;;  %v712_v4 = vld [vmem:[%s225_s28] sm:$0xff]   ;;  %v715_v31 = vld [vmem:[%s887_s2 + $0x8] sm:$0xff]   ;;  %s769_s25 = smov 96  }
  0x1b   : > { %649 = vmatpush3.bf16.msra.mxu1 %v711_v3  ;;  %652 = vmatprep.mubr.msk.bf16.mxu1 %vm766_vm1, %v765_v2  ;;  %v314_v6 = vld [vmem:[#allocation2] sm:$0xff] }
  0x1c   : > { %650 = vmatprep.subr.bf16.mxu1 %v765_v2  ;;  %656 = vmatprep.subr.bf16.mxu0 %v765_v2  ;;  %v317_v7 = vpack.c.bf16 %v314_v6, %v314_v6  ;;  %v617_v8 = vld [vmem:[%s888_s3] ss:$0 sm:$0xff] }
  0x1d   : > { %645 = vmatmul.mubr.msk.bf16.vlgmr.msra.gmra.mrb[0].mxu0 %vm267_vm2, %v712_v4  ;;  %v714_v30 = vld [vmem:[%s887_s2] sm:$0xff]  }
  0x1e   : > { %660 = vmatprep.mubr.msk.bf16.mxu0 %vm766_vm1, %v765_v2  ;;  %657 = vmatpush3.bf16.msra.mxu0 %v714_v30 }
  0x1f   : > { %651 = vmatpush3.bf16.msra.mxu1 %v713_v5  ;;  %658 = vmatprep.subr.bf16.mxu0 %v765_v2 }
  0x22   : > { %653 = vmatmul.mubr.msk.bf16.vlgmr.msra.gmra.mrb[0].mxu1 %vm334_vm3, %v317_v7  ;;  %659 = vmatpush3.bf16.msra.mxu0 %v715_v31 }
  0xf0   : > { %v305_v9 = vpop.f32.mrb[0].mxu0 }
  0xf1   : > { %v646_v10 = vpop.f32.mrb[1].mxu0  ;;  %v306_v11 = vadd.f32 %v617_v8, %v305_v9 }
  0xf2   : > { %v308_v12 = vpop.f32.mrb[2].mxu0 }
  0xf3   : > { %v309_v13 = vadd.f32 %v617_v8, %v308_v12  ;;  %v647_v14 = vpop.f32.mrb[3].mxu0 }
  0xf5   : > { %v372_v15 = vpop.f32.mrb[0].mxu1 }
  0xf6   : > { %v378_v16 = vadd.f32 %v372_v15, %v306_v11  ;;  %v654_v17 = vpop.f32.mrb[1].mxu1 }
  0xf7   : > { %v375_v18 = vpop.f32.mrb[2].mxu1 }
  0xf8   : > { %716 = vtanh.f32 %v378_v16  ;;  %v655_v19 = vpop.f32.mrb[3].mxu1 }
 0x102   : > { %v717_v20 = vpop.eup %716 }
 0x103   : > { %388 = vrot.lane.b32.xlu0 %v717_v20, %s767_s14  ;;  %v380_v22 = vmul.f32 0.5, %v717_v20 }
 0x105   : > { %v381_v23 = vadd.f32 0.5, %v380_v22 }
 0x107   : > { %383 = vrot.lane.b32.xlu0 %v315_v21, %s768_s15 }
 0x175   : > { %v389_v24 = vpop.permute.xlu0 %388 }
 0x176   : > { %v391_v25 = vmul.f32 %v389_v24, %v381_v23 }
 0x178   : > { %393 = vrot.lane.b32.xlu1 %v391_v25, %s768_s15 }
 0x179   : > { %v384_v26 = vpop.permute.xlu0 %383 }
 0x17a   : > { %v386_v27 = vmul.f32 %v384_v26, %v381_v23 }
 0x1ea   : > { %v394_v28 = vpop.permute.xlu1 %393 }
 0x1eb   : > { %v396_v29 = vadd.f32 %v394_v28, %v386_v27 }
 0x1ed   : > { %718 = vtanh.f32 %v396_v29 }
 0x1f7   : > { %v719_v32 = vpop.eup %718 }
 0x1f8   : > { %399 = vrot.lane.b32.xlu1 %v719_v32, %s767_s14 }
 0x26a   : > { %v400_v33 = vpop.permute.xlu1 %399 }
 0x26b   : > { %v402_v34 = vmul.f32 %v400_v33, %v381_v23 }
 0x26d   : > { %v403_v35 = vpack.c.bf16 %v402_v34, %v402_v34 }
 0x26f   : > { %418 = vrot.lane.b32.xlu0 %v403_v35, %s768_s15 }
 0x2e1   : > { %v419_v36 = vpop.permute.xlu0 %418 }
 0x2e2   : > { %661 = vmatmul.mubr.msk.bf16.vlgmr.msra.gmra.mrb[4].mxu0 %vm334_vm3, %v419_v36 }
 0x3b5   : > { %v469_v37 = vpop.f32.mrb[4].mxu0 }
 0x3b6   : > { %v475_v38 = vadd.f32 %v469_v37, %v309_v13  ;;  %v662_v39 = vpop.f32.mrb[5].mxu0 }
 0x3b7   : > { %v472_v40 = vpop.f32.mrb[6].mxu0 }
 0x3b8   : > { %720 = vtanh.f32 %v475_v38  ;;  %v663_v41 = vpop.f32.mrb[7].mxu0 }
 0x3c2   : > { %v721_v42 = vpop.eup %720 }
 0x3c3   : > { %481 = vrot.lane.b32.xlu1 %v721_v42, %s767_s14  ;;  %v477_v43 = vmul.f32 0.5, %v721_v42 }
 0x3c5   : > { %v478_v44 = vadd.f32 0.5, %v477_v43 }
 0x3c7   : > { %v479_v47 = vmul.f32 %v478_v44, %v396_v29 }
 0x435   : > { %v482_v45 = vpop.permute.xlu1 %481 }
 0x436   : > { %v484_v46 = vmul.f32 %v482_v45, %v478_v44 }
 0x438   : > { %486 = vrot.lane.b32.xlu0 %v484_v46, %s768_s15 }
 0x43c   : > { %407 = vrot.lane.b32.xlu0 %v403_v35, %s768_s15 }
 0x4aa   : > { %v487_v48 = vpop.permute.xlu0 %486 }
 0x4ab   : > { %v489_v49 = vadd.f32 %v487_v48, %v479_v47 }
 0x4ad   : > { %722 = vtanh.f32 %v489_v49 }
 0x4ae   : > { %v408_v50 = vpop.permute.xlu0 %407 }
 0x4af   : > { %411 = vst.msk [vmem:[%s831_s5] sm:$0xf] %vm410_vm4, %v408_v50 }
 0x4b7   : > { %v723_v51 = vpop.eup %722 }
 0x4b8   : > { %492 = vrot.lane.b32.xlu1 %v723_v51, %s767_s14 }
 0x52a   : > { %v493_v52 = vpop.permute.xlu1 %492 }
 0x52b   : > { %v495_v53 = vmul.f32 %v493_v52, %v478_v44 }
 0x52d   : > { %v633_v54 = vpack.c.bf16 %v495_v53, %v495_v53  ;;  %506 = vrot.lane.b32.xlu0 %v495_v53, %s768_s15 }
 0x52f   : > { %500 = vrot.lane.b32.xlu1 %v633_v54, %s768_s15 }
 0x533   : > { %511 = vrot.lane.b32.xlu1 %v489_v49, %s769_s25 }
 0x59f   : > { %v507_v55 = vpop.permute.xlu0 %506 }
 0x5a0   : > { %509 = vst.msk [vmem:[#allocation2] sm:$0xff] %vm334_vm3, %v507_v55 }
 0x5a1   : > { %v501_v56 = vpop.permute.xlu1 %500 }
 0x5a2   : > { %629 = vst.msk [vmem:[%s831_s5 + $0x4] sm:$0xf] %vm410_vm4, %v501_v56 }
 0x5a5   : > { %v512_v57 = vpop.permute.xlu1 %511 }
 0x5a6   : > { %514 = vst.msk [vmem:[#allocation3] sm:$0xff] %vm334_vm3, %v512_v57 }
 0x5a7 PF: > { %s14_s19 = sadd.s32 1, %s762_s19   ;;  %s890_s15 = smov %s754_s17 }
 0x5a8   : > { %p11_p8 = scmp.ge.s32.totalorder %s14_s19, 10   ;;  %s891_s16 = smov %s758_s18 }
 0x5a9   : > { %s892_s17 = smov %s895_s20  ;;  %s893_s18 = smov %s899_s21 }
 0x5aa   :  { %13 = sbr.rel (!%p11_p8) target bundleno = 3 (0x3), region = 72 }

</bundles_post_ra>
